<compile_context>
chip_gen: v6e
topology: v6e:2x2x1
jax: 0.10.0
libtpu: 0.0.40
codegen_flags: <defaults>
</compile_context>

<pallas_src>
import functools

import jax
import jax.numpy as jnp
from jax import lax
from jax.experimental import pallas as pl
from jax.experimental.pallas import tpu as pltpu


def _round_up(a, b):
    return (a + b - 1) // b * b


def _causal_conv_kernel(*refs, K, dilation, pad, HALO, L_tile, B_tile):
    if pad > 0:
        x_ref, h_ref, w_ref, b_ref, o_ref, xs_ref = refs
    else:
        x_ref, w_ref, b_ref, o_ref = refs

    C_in = x_ref.shape[1]
    C_out = w_ref.shape[1]

    if pad > 0:
        j = pl.program_id(1)
        # Stage the current tile at a 128-aligned lane offset of the scratch;
        # only the tiny pad-wide halo sliver in front of it is unaligned.
        xs_ref[:, :, HALO:] = x_ref[...]

        @pl.when(j == 0)
        def _():  # causal left boundary: zeros
            xs_ref[:, :, HALO - pad:HALO] = jnp.zeros(
                (B_tile, C_in, pad), dtype=xs_ref.dtype)

        @pl.when(j > 0)
        def _():  # last `pad` input columns before this tile, re-fetched from HBM
            xs_ref[:, :, HALO - pad:HALO] = h_ref[:, :, HALO - pad:]

    bias = b_ref[...]                                   # (C_out, 1) f32
    for b in range(B_tile):
        if pad > 0:
            acc = jnp.zeros((C_out, L_tile), dtype=jnp.float32)
            for k in range(K):
                off = HALO - pad + k * dilation         # static slice offsets
                acc = acc + jnp.dot(w_ref[k], xs_ref[b, :, off:off + L_tile],
                                    preferred_element_type=jnp.float32)
        else:  # K == 1: plain pointwise conv
            acc = jnp.dot(w_ref[0], x_ref[b], preferred_element_type=jnp.float32)
        o_ref[b] = (acc + bias).astype(o_ref.dtype)


def causal_conv1d(x, weight_v, weight_g, bias, *, dilation=1,
                  l_tile_max=None, b_tile_max=8,
                  vmem_block_budget_bytes=16 * 1024 * 1024):
    """x: (N, C_in, L); weight_v: (C_out, C_in, K); weight_g: (C_out, 1, 1); bias: (C_out,)."""
    N, C_in, L = x.shape
    C_out, _, K = weight_v.shape
    pad = (K - 1) * dilation
    LANE = 128

    # ---- weight_norm in f32: w = g * v / ||v|| (norm over (C_in, K) per out channel),
    #      then split per tap: w_taps[k, o, c] = w[o, c, k].
    v32 = weight_v.astype(jnp.float32)
    v_norm = jnp.sqrt(jnp.sum(v32 * v32, axis=(1, 2), keepdims=True))
    w_eff = weight_g.astype(jnp.float32) * v32 / v_norm              # (C_out, C_in, K)
    w_taps = jnp.transpose(w_eff, (2, 0, 1)).astype(x.dtype)         # (K, C_out, C_in)
    b2d = bias.reshape(C_out, 1).astype(jnp.float32)

    # ---- VMEM-budgeted tiling (time axis first, then batch blocking if L is short).
    HALO = _round_up(max(pad, 1), LANE)          # lane-aligned halo width (>= pad)
    isz = jnp.dtype(x.dtype).itemsize
    ci8 = _round_up(C_in, 8)
    co8 = _round_up(C_out, 8)
    # Live bytes per (batch row x time column): 2x in + 2x out (double buffer) + staging.
    per_col = 2 * ci8 * isz + 2 * co8 * isz + ci8 * isz
    cols_budget = max(vmem_block_budget_bytes // per_col, HALO)
    L_tile = min(_round_up(L, HALO), cols_budget // HALO * HALO)
    if l_tile_max is not None:                   # test / benchmark override
        L_tile = min(L_tile, max(HALO, l_tile_max // HALO * HALO))
    L_tile = max(L_tile, HALO)
    B_tile = int(min(N, b_tile_max, max(1, cols_budget // L_tile)))

    num_nb = pl.cdiv(N, B_tile)
    num_lt = pl.cdiv(L, L_tile)
    r = L_tile // HALO                            # halo blocks per time tile

    # ---- Scoped VMEM limit from the actual footprint (<= 32 MiB: v7x-safe).
    in_blk = B_tile * ci8 * L_tile * isz
    halo_blk = (B_tile * ci8 * HALO * isz) if pad > 0 else 0
    out_blk = B_tile * co8 * L_tile * isz
    scratch_blk = (B_tile * ci8 * (HALO + L_tile) * isz) if pad > 0 else 0
    footprint = 2 * (in_blk + halo_blk + out_blk) + scratch_blk + (1 << 20)
    vmem_limit = int(min(32 * 1024 * 1024, max(8 * 1024 * 1024,
                                               footprint + (footprint >> 1))))

    kernel = functools.partial(_causal_conv_kernel, K=K, dilation=dilation, pad=pad,
                               HALO=HALO, L_tile=L_tile, B_tile=B_tile)

    main_spec = pl.BlockSpec((B_tile, C_in, L_tile), lambda nb, j: (nb, 0, j))
    w_spec = pl.BlockSpec((K, C_out, C_in), lambda nb, j: (0, 0, 0))
    b_spec = pl.BlockSpec((C_out, 1), lambda nb, j: (0, 0))
    out_spec = pl.BlockSpec((B_tile, C_out, L_tile), lambda nb, j: (nb, 0, j))

    if pad > 0:
        # Narrow overlapping window: the HALO columns just before this time tile,
        # re-fetched from HBM via a second spec on the SAME input array.
        halo_spec = pl.BlockSpec(
            (B_tile, C_in, HALO),
            lambda nb, j: (nb, 0, jnp.maximum(j * r - 1, 0)))
        in_specs = [main_spec, halo_spec, w_spec, b_spec]
        scratch_shapes = [pltpu.VMEM((B_tile, C_in, HALO + L_tile), x.dtype)]
        args = (x, x, w_taps, b2d)
    else:
        in_specs = [main_spec, w_spec, b_spec]
        scratch_shapes = []
        args = (x, w_taps, b2d)

    return pl.pallas_call(
        kernel,
        out_shape=jax.ShapeDtypeStruct((N, C_out, L), x.dtype),
        grid_spec=pltpu.PrefetchScalarGridSpec(
            num_scalar_prefetch=0,
            grid=(num_nb, num_lt),
            in_specs=in_specs,
            out_specs=out_spec,
            scratch_shapes=scratch_shapes,
        ),
        compiler_params=pltpu.CompilerParams(
            # No cross-iteration carry -> both grid axes shard across TensorCores.
            dimension_semantics=("parallel", "parallel"),
            vmem_limit_bytes=vmem_limit,
        ),
    )(*args)


def _reference(x, weight_v, weight_g, bias, *, dilation=1):
    """Plain-JAX reference of the same causal conv (for a sanity check)."""
    C_out, C_in, K = weight_v.shape
    pad = (K - 1) * dilation
    v_norm = jnp.sqrt(jnp.sum(weight_v.astype(jnp.float32) ** 2, axis=(1, 2), keepdims=True))
    w_eff = (weight_g * weight_v / v_norm).astype(jnp.float32)
    out = lax.conv_general_dilated(
        x.astype(jnp.float32), w_eff,
        window_strides=(1,), padding=[(pad, 0)], rhs_dilation=(dilation,),
        dimension_numbers=("NCH", "OIH", "NCH"))
    return out + bias.reshape(1, C_out, 1)


if __name__ == "__main__":
    # Small shapes consistent with the module: batch=2, in_ch=4, out_ch=8, L=16, K=3.
    N, C_in, C_out, L, K, dilation = 2, 4, 8, 16, 3, 1

    key = jax.random.PRNGKey(0)
    kx, kv, kb = jax.random.split(key, 3)

    x = jax.random.normal(kx, (N, C_in, L), dtype=jnp.float32)
    # Conv1d weight ~ N(0, 0.01) as in the module's __init__ (v of weight_norm).
    weight_v = 0.01 * jax.random.normal(kv, (C_out, C_in, K), dtype=jnp.float32)
    # weight_norm init sets g = ||v|| per output channel.
    weight_g = jnp.sqrt(jnp.sum(weight_v ** 2, axis=(1, 2), keepdims=True))
    # Conv1d default bias init: U(-1/sqrt(fan_in), 1/sqrt(fan_in)).
    bound = 1.0 / jnp.sqrt(float(C_in * K))
    bias = jax.random.uniform(kb, (C_out,), dtype=jnp.float32, minval=-bound, maxval=bound)

    out = jax.block_until_ready(causal_conv1d(x, weight_v, weight_g, bias, dilation=dilation))
    ref = _reference(x, weight_v, weight_g, bias, dilation=dilation)
    assert out.shape == (N, C_out, L)
    assert jnp.allclose(out, ref, atol=1e-5, rtol=1e-5)

    # Multi time-tile + dilation: exercises the HBM halo re-fetch and the ragged last block.
    L2, dil2 = 300, 4
    x2 = jax.random.normal(jax.random.PRNGKey(1), (N, C_in, L2), dtype=jnp.float32)
    out2 = jax.block_until_ready(
        causal_conv1d(x2, weight_v, weight_g, bias, dilation=dil2, l_tile_max=128))
    ref2 = _reference(x2, weight_v, weight_g, bias, dilation=dil2)
    assert out2.shape == (N, C_out, L2)
    assert jnp.allclose(out2, ref2, atol=1e-5, rtol=1e-5)

    # Ragged batch block: N not divisible by B_tile (batch blocking + masking path).
    N3 = 3
    x3 = jax.random.normal(jax.random.PRNGKey(2), (N3, C_in, L2), dtype=jnp.float32)
    out3 = jax.block_until_ready(
        causal_conv1d(x3, weight_v, weight_g, bias, dilation=dil2,
                      l_tile_max=128, b_tile_max=2))
    ref3 = _reference(x3, weight_v, weight_g, bias, dilation=dil2)
    assert out3.shape == (N3, C_out, L2)
    assert jnp.allclose(out3, ref3, atol=1e-5, rtol=1e-5)

    print("KERNEL_OK")
</pallas_src>

<mosaic_0001>
module attributes {stable_mosaic.version = 11 : i64} {
  func.func @_causal_conv_kernel(%arg0: i32, %arg1: i32, %arg2: memref<2x4x128xf32, #tpu.memory_space<vmem>>, %arg3: memref<2x4x128xf32, #tpu.memory_space<vmem>>, %arg4: memref<3x8x4xf32, #tpu.memory_space<vmem>>, %arg5: memref<8x1xf32, #tpu.memory_space<vmem>>, %arg6: memref<2x8x128xf32, #tpu.memory_space<vmem>>, %arg7: memref<2x4x256xf32, #tpu.memory_space<vmem>>) attributes {dimension_semantics = [#tpu.dimension_semantics<parallel>, #tpu.dimension_semantics<parallel>], iteration_bounds = array<i64: 1, 1>, scalar_prefetch = 0 : i64, scratch_operands = 1 : i64, tpu.core_type = #tpu.core_type<tc>, window_params = [{transform_indices = @transform_0, window_bounds = array<i64: 2, 4, 128>}, {transform_indices = @transform_1, window_bounds = array<i64: 2, 4, 128>}, {pipeline_mode = #tpu.pipeline_mode<synchronous>, transform_indices = @transform_2, window_bounds = array<i64: 3, 8, 4>}, {pipeline_mode = #tpu.pipeline_mode<synchronous>, transform_indices = @transform_3, window_bounds = array<i64: 8, 1>}, {transform_indices = @transform_4, window_bounds = array<i64: 2, 8, 128>}]} {
    %c0 = arith.constant 0 : index
    %c0_0 = arith.constant 0 : index
    %c0_1 = arith.constant 0 : index
    %0 = vector.load %arg2[%c0, %c0_0, %c0_1] : memref<2x4x128xf32, #tpu.memory_space<vmem>>, vector<2x4x128xf32>
    %c0_2 = arith.constant 0 : index
    %c0_3 = arith.constant 0 : index
    %c128 = arith.constant 128 : index
    %1 = vector.load %arg7[%c0_2, %c0_3, %c128] : memref<2x4x256xf32, #tpu.memory_space<vmem>>, vector<2x4x128xf32>
    tpu.vector_store %arg7[%c0_2, %c0_3, %c128], %0 {strides = array<i32>} : memref<2x4x256xf32, #tpu.memory_space<vmem>>, vector<2x4x128xf32>,
    %c0_i32 = arith.constant 0 : i32
    %2 = arith.cmpi eq, %arg1, %c0_i32 : i32
    %3 = arith.extui %2 : i1 to i32
    %c0_i32_4 = arith.constant 0 : i32
    %4 = arith.cmpi ne, %3, %c0_i32_4 : i32
    scf.if %4 {
      %cst_54 = arith.constant 0.000000e+00 : f32
      %57 = vector.broadcast %cst_54 : f32 to vector<2x4x2xf32>
      %c0_55 = arith.constant 0 : index
      %c0_56 = arith.constant 0 : index
      %c126_57 = arith.constant 126 : index
      %58 = vector.load %arg7[%c0_55, %c0_56, %c126_57] : memref<2x4x256xf32, #tpu.memory_space<vmem>>, vector<2x4x2xf32>
      tpu.vector_store %arg7[%c0_55, %c0_56, %c126_57], %57 {strides = array<i32>} : memref<2x4x256xf32, #tpu.memory_space<vmem>>, vector<2x4x2xf32>,
    } else {
    }
    %c0_i32_5 = arith.constant 0 : i32
    %5 = arith.cmpi sgt, %arg1, %c0_i32_5 : i32
    %6 = arith.extui %5 : i1 to i32
    %c0_i32_6 = arith.constant 0 : i32
    %7 = arith.cmpi ne, %6, %c0_i32_6 : i32
    scf.if %7 {
      %c0_54 = arith.constant 0 : index
      %c0_55 = arith.constant 0 : index
      %c126_56 = arith.constant 126 : index
      %57 = vector.load %arg3[%c0_54, %c0_55, %c126_56] : memref<2x4x128xf32, #tpu.memory_space<vmem>>, vector<2x4x2xf32>
      %c0_57 = arith.constant 0 : index
      %c0_58 = arith.constant 0 : index
      %c126_59 = arith.constant 126 : index
      %58 = vector.load %arg7[%c0_57, %c0_58, %c126_59] : memref<2x4x256xf32, #tpu.memory_space<vmem>>, vector<2x4x2xf32>
      tpu.vector_store %arg7[%c0_57, %c0_58, %c126_59], %57 {strides = array<i32>} : memref<2x4x256xf32, #tpu.memory_space<vmem>>, vector<2x4x2xf32>,
    } else {
    }
    %c0_7 = arith.constant 0 : index
    %c0_8 = arith.constant 0 : index
    %8 = vector.load %arg5[%c0_7, %c0_8] : memref<8x1xf32, #tpu.memory_space<vmem>>, vector<8x1xf32>
    %cst = arith.constant 0.000000e+00 : f32
    %9 = vector.broadcast %cst : f32 to vector<8x128xf32>
    %c0_9 = arith.constant 0 : index
    %c0_10 = arith.constant 0 : index
    %c0_11 = arith.constant 0 : index
    %10 = vector.load %arg4[%c0_9, %c0_10, %c0_11] : memref<3x8x4xf32, #tpu.memory_space<vmem>>, vector<1x8x4xf32>
    %11 = vector.shape_cast %10 : vector<1x8x4xf32> to vector<8x4xf32>
    %c0_12 = arith.constant 0 : index
    %c0_13 = arith.constant 0 : index
    %c126 = arith.constant 126 : index
    %12 = vector.load %arg7[%c0_12, %c0_13, %c126] : memref<2x4x256xf32, #tpu.memory_space<vmem>>, vector<1x4x128xf32>
    %13 = vector.shape_cast %12 : vector<1x4x128xf32> to vector<4x128xf32>
    %cst_14 = arith.constant dense<0.000000e+00> : vector<8x128xf32>
    %14 = tpu.matmul %11, %13, %cst_14 {dimension_numbers = #tpu.dot_dimension_numbers<[1], [0], [0], [1], [0, 0, 1, 1], [], []>} : vector<8x4xf32>, vector<4x128xf32>, vector<8x128xf32> -> vector<8x128xf32>
    %15 = arith.addf %9, %14 : vector<8x128xf32>
    %c1 = arith.constant 1 : index
    %c0_15 = arith.constant 0 : index
    %c0_16 = arith.constant 0 : index
    %16 = vector.load %arg4[%c1, %c0_15, %c0_16] : memref<3x8x4xf32, #tpu.memory_space<vmem>>, vector<1x8x4xf32>
    %17 = vector.shape_cast %16 : vector<1x8x4xf32> to vector<8x4xf32>
    %c0_17 = arith.constant 0 : index
    %c0_18 = arith.constant 0 : index
    %c127 = arith.constant 127 : index
    %18 = vector.load %arg7[%c0_17, %c0_18, %c127] : memref<2x4x256xf32, #tpu.memory_space<vmem>>, vector<1x4x128xf32>
    %19 = vector.shape_cast %18 : vector<1x4x128xf32> to vector<4x128xf32>
    %cst_19 = arith.constant dense<0.000000e+00> : vector<8x128xf32>
    %20 = tpu.matmul %17, %19, %cst_19 {dimension_numbers = #tpu.dot_dimension_numbers<[1], [0], [0], [1], [0, 0, 1, 1], [], []>} : vector<8x4xf32>, vector<4x128xf32>, vector<8x128xf32> -> vector<8x128xf32>
    %21 = arith.addf %15, %20 : vector<8x128xf32>
    %c2 = arith.constant 2 : index
    %c0_20 = arith.constant 0 : index
    %c0_21 = arith.constant 0 : index
    %22 = vector.load %arg4[%c2, %c0_20, %c0_21] : memref<3x8x4xf32, #tpu.memory_space<vmem>>, vector<1x8x4xf32>
    %23 = vector.shape_cast %22 : vector<1x8x4xf32> to vector<8x4xf32>
    %c0_22 = arith.constant 0 : index
    %c0_23 = arith.constant 0 : index
    %c128_24 = arith.constant 128 : index
    %24 = vector.load %arg7[%c0_22, %c0_23, %c128_24] : memref<2x4x256xf32, #tpu.memory_space<vmem>>, vector<1x4x128xf32>
    %25 = vector.shape_cast %24 : vector<1x4x128xf32> to vector<4x128xf32>
    %cst_25 = arith.constant dense<0.000000e+00> : vector<8x128xf32>
    %26 = tpu.matmul %23, %25, %cst_25 {dimension_numbers = #tpu.dot_dimension_numbers<[1], [0], [0], [1], [0, 0, 1, 1], [], []>} : vector<8x4xf32>, vector<4x128xf32>, vector<8x128xf32> -> vector<8x128xf32>
    %27 = arith.addf %21, %26 : vector<8x128xf32>
    %28 = vector.broadcast %8 : vector<8x1xf32> to vector<8x128xf32>
    %29 = arith.addf %27, %28 : vector<8x128xf32>
    %c0_26 = arith.constant 0 : index
    %c0_27 = arith.constant 0 : index
    %c0_28 = arith.constant 0 : index
    %30 = vector.load %arg6[%c0_26, %c0_27, %c0_28] : memref<2x8x128xf32, #tpu.memory_space<vmem>>, vector<1x8x128xf32>
    %31 = vector.shape_cast %30 : vector<1x8x128xf32> to vector<8x128xf32>
    %32 = vector.shape_cast %29 : vector<8x128xf32> to vector<1x8x128xf32>
    tpu.vector_store %arg6[%c0_26, %c0_27, %c0_28], %32 {strides = array<i32>} : memref<2x8x128xf32, #tpu.memory_space<vmem>>, vector<1x8x128xf32>,
    %cst_29 = arith.constant 0.000000e+00 : f32
    %33 = vector.broadcast %cst_29 : f32 to vector<8x128xf32>
    %c0_30 = arith.constant 0 : index
    %c0_31 = arith.constant 0 : index
    %c0_32 = arith.constant 0 : index
    %34 = vector.load %arg4[%c0_30, %c0_31, %c0_32] : memref<3x8x4xf32, #tpu.memory_space<vmem>>, vector<1x8x4xf32>
    %35 = vector.shape_cast %34 : vector<1x8x4xf32> to vector<8x4xf32>
    %c1_33 = arith.constant 1 : index
    %c0_34 = arith.constant 0 : index
    %c126_35 = arith.constant 126 : index
    %36 = vector.load %arg7[%c1_33, %c0_34, %c126_35] : memref<2x4x256xf32, #tpu.memory_space<vmem>>, vector<1x4x128xf32>
    %37 = vector.shape_cast %36 : vector<1x4x128xf32> to vector<4x128xf32>
    %cst_36 = arith.constant dense<0.000000e+00> : vector<8x128xf32>
    %38 = tpu.matmul %35, %37, %cst_36 {dimension_numbers = #tpu.dot_dimension_numbers<[1], [0], [0], [1], [0, 0, 1, 1], [], []>} : vector<8x4xf32>, vector<4x128xf32>, vector<8x128xf32> -> vector<8x128xf32>
    %39 = arith.addf %33, %38 : vector<8x128xf32>
    %c1_37 = arith.constant 1 : index
    %c0_38 = arith.constant 0 : index
    %c0_39 = arith.constant 0 : index
    %40 = vector.load %arg4[%c1_37, %c0_38, %c0_39] : memref<3x8x4xf32, #tpu.memory_space<vmem>>, vector<1x8x4xf32>
    %41 = vector.shape_cast %40 : vector<1x8x4xf32> to vector<8x4xf32>
    %c1_40 = arith.constant 1 : index
    %c0_41 = arith.constant 0 : index
    %c127_42 = arith.constant 127 : index
    %42 = vector.load %arg7[%c1_40, %c0_41, %c127_42] : memref<2x4x256xf32, #tpu.memory_space<vmem>>, vector<1x4x128xf32>
    %43 = vector.shape_cast %42 : vector<1x4x128xf32> to vector<4x128xf32>
    %cst_43 = arith.constant dense<0.000000e+00> : vector<8x128xf32>
    %44 = tpu.matmul %41, %43, %cst_43 {dimension_numbers = #tpu.dot_dimension_numbers<[1], [0], [0], [1], [0, 0, 1, 1], [], []>} : vector<8x4xf32>, vector<4x128xf32>, vector<8x128xf32> -> vector<8x128xf32>
    %45 = arith.addf %39, %44 : vector<8x128xf32>
    %c2_44 = arith.constant 2 : index
    %c0_45 = arith.constant 0 : index
    %c0_46 = arith.constant 0 : index
    %46 = vector.load %arg4[%c2_44, %c0_45, %c0_46] : memref<3x8x4xf32, #tpu.memory_space<vmem>>, vector<1x8x4xf32>
    %47 = vector.shape_cast %46 : vector<1x8x4xf32> to vector<8x4xf32>
    %c1_47 = arith.constant 1 : index
    %c0_48 = arith.constant 0 : index
    %c128_49 = arith.constant 128 : index
    %48 = vector.load %arg7[%c1_47, %c0_48, %c128_49] : memref<2x4x256xf32, #tpu.memory_space<vmem>>, vector<1x4x128xf32>
    %49 = vector.shape_cast %48 : vector<1x4x128xf32> to vector<4x128xf32>
    %cst_50 = arith.constant dense<0.000000e+00> : vector<8x128xf32>
    %50 = tpu.matmul %47, %49, %cst_50 {dimension_numbers = #tpu.dot_dimension_numbers<[1], [0], [0], [1], [0, 0, 1, 1], [], []>} : vector<8x4xf32>, vector<4x128xf32>, vector<8x128xf32> -> vector<8x128xf32>
    %51 = arith.addf %45, %50 : vector<8x128xf32>
    %52 = vector.broadcast %8 : vector<8x1xf32> to vector<8x128xf32>
    %53 = arith.addf %51, %52 : vector<8x128xf32>
    %c1_51 = arith.constant 1 : index
    %c0_52 = arith.constant 0 : index
    %c0_53 = arith.constant 0 : index
    %54 = vector.load %arg6[%c1_51, %c0_52, %c0_53] : memref<2x8x128xf32, #tpu.memory_space<vmem>>, vector<1x8x128xf32>
    %55 = vector.shape_cast %54 : vector<1x8x128xf32> to vector<8x128xf32>
    %56 = vector.shape_cast %53 : vector<8x128xf32> to vector<1x8x128xf32>
    tpu.vector_store %arg6[%c1_51, %c0_52, %c0_53], %56 {strides = array<i32>} : memref<2x8x128xf32, #tpu.memory_space<vmem>>, vector<1x8x128xf32>,
    return
  }
  func.func @transform_0(%arg0: i32, %arg1: i32) -> (i32, i32, i32) {
    %c0_i32 = arith.constant 0 : i32
    %c0_i32_0 = arith.constant 0 : i32
    return %arg0, %c0_i32, %arg1 : i32, i32, i32
  }
  func.func @transform_1(%arg0: i32, %arg1: i32) -> (i32, i32, i32) {
    %c1_i32 = arith.constant 1 : i32
    %0 = arith.muli %arg1, %c1_i32 : i32
    %c1_i32_0 = arith.constant 1 : i32
    %1 = arith.subi %0, %c1_i32_0 : i32
    %c0_i32 = arith.constant 0 : i32
    %2 = arith.maxsi %1, %c0_i32 : i32
    %c0_i32_1 = arith.constant 0 : i32
    %c0_i32_2 = arith.constant 0 : i32
    return %arg0, %c0_i32_1, %2 : i32, i32, i32
  }
  func.func @transform_2(%arg0: i32, %arg1: i32) -> (i32, i32, i32) {
    %c0_i32 = arith.constant 0 : i32
    %c0_i32_0 = arith.constant 0 : i32
    %c0_i32_1 = arith.constant 0 : i32
    %c0_i32_2 = arith.constant 0 : i32
    return %c0_i32, %c0_i32_0, %c0_i32_1 : i32, i32, i32
  }
  func.func @transform_3(%arg0: i32, %arg1: i32) -> (i32, i32) {
    %c0_i32 = arith.constant 0 : i32
    %c0_i32_0 = arith.constant 0 : i32
    %c0_i32_1 = arith.constant 0 : i32
    return %c0_i32, %c0_i32_0 : i32, i32
  }
  func.func @transform_4(%arg0: i32, %arg1: i32) -> (i32, i32, i32) {
    %c0_i32 = arith.constant 0 : i32
    %c0_i32_0 = arith.constant 0 : i32
    return %arg0, %c0_i32, %arg1 : i32, i32, i32
  }
}

</mosaic_0001>

<bundles_post_ra>
// kernel: tpu_custom_call.1
= control target key start
LH: loop header
LB: loop body
LE: loop exit
PB: predicated region body
PF: predicated region fallthrough
CT: control target
= control target key end

     0   :  { %vm53_vm0 = vcmask 1044464   ;;  %v684_v1 = vmov 0.0   ;;  %vm685_vm1 = vmmov 0   ;;  %s774_s0 = inlined_call_operand.vmem [shape: f32[2,4,16], index: 0, kind: input, shape index: {}]   ;;  %s775_s1 = inlined_call_operand.vmem [shape: f32[2,4,16], index: 1, kind: input, shape index: {}]   ;;  %s776_s2 = inlined_call_operand.vmem [shape: f32[3,8,4], index: 2, kind: input, shape index: {}]   ;;  %s777_s3 = inlined_call_operand.vmem [shape: f32[8,1], index: 3, kind: input, shape index: {}]   ;;  %s778_s4 = inlined_call_operand.hbm [shape: f32[2,8,16], index: 4, kind: output, shape index: {}]  }
   0x1   :  { %v45_v0 = vld [vmem:[%s774_s0] sm:$0xf]  ;;  %54 = vst.msk [vmem:[#allocation2] sm:$0xf] %vm53_vm0, %v684_v1  ;;  %55 = vst.msk [vmem:[#allocation2 + $0x8] sm:$0xf] %vm53_vm0, %v684_v1  ;;  %621 = vmatprep.subr.mxu0 %v684_v1  ;;  %626 = vmatprep.subr.mxu1 %v684_v1 }
   0x2   :  { %47 = vst [vmem:[#allocation2 + $0x4] sm:$0xf] %v45_v0  ;;  %v46_v2 = vld [vmem:[%s774_s0 + $0x4] sm:$0xf]  ;;  %623 = vmatprep.mubr.msk.f32.mxu0 %vm685_vm1, %v684_v1  ;;  %628 = vmatprep.mubr.msk.f32.mxu1 %vm685_vm1, %v684_v1 }
   0x3   :  { %48 = vst [vmem:[#allocation2 + $0xc] sm:$0xf] %v46_v2 }
   0x4   :  { %9 = vsyncpa [#allocation4], 0  ;;  %s686_s18 = smov 2   ;;  %s687_s19 = smov 1   ;;  %v688_v6 = vmov 0   ;;  %v65_v8 = vld [vmem:[%s777_s3] sm:$0xff] }
   0x5   :  { %659 = vset.pattern.permute.xlu0 %v688_v6  ;;  %vm76_vm2 = vcmask 7168   ;;  %vm159_vm3 = vcmask 15360   ;;  %vm82_vm4 = vcmask 1043456   ;;  %v593_v13 = vld [vmem:[%s776_s2 + $0x8] sm:$0xff]  ;;  %vm78_vm5 = vcmask 31744   ;;  %v66_v16 = vld [vmem:[%s776_s2] sm:$0xff] }
   0x6   :  { %v598_v20 = vld [vmem:[%s776_s2 + $0x10] sm:$0xff]  ;;  %s689_s2 = smov [#allocation3]  }
   0x7   :  { %s576_s26 = sshll.u32 %s689_s2, 4  ;;  %s577_s26 = int_to_ptr.vmem [resolvable:$true] %s576_s26 }
   0x8   :  { %s662_s27 = scalar_lea.vmem %s577_s26, 256  ;;  %p667_p1 = scmp.lt.s32.totalorder %s577_s26, %s577_s26 }
   0x9   :  { %v67_v3 = vld [vmem:[#allocation2] sm:$0xff]  ;;  %p663_p0 = scmp.ne.s32.totalorder %s577_s26, %s662_s27  ;;  %p668_p2 = scmp.lt.s32.totalorder %s662_s27, %s662_s27 }
   0xa   :  { %155 = vrot.lane.b32.xlu1 %v67_v3, %s686_s18  ;;  %72 = vrot.lane.b32.xlu0 %v67_v3, %s687_s19  ;;  %v71_v4 = vcombine.high %v67_v3, %v67_v3  ;;  %v325_v5 = vld [vmem:[#allocation2 + $0x8] sm:$0xff]  ;;  %v238_v17 = vld [vmem:[#allocation2 + $0x4] sm:$0xf] }
   0xb   :  { %v328_v7 = vcombine.high %v325_v5, %v325_v5  ;;  %v490_v22 = vld [vmem:[#allocation2 + $0xc] sm:$0xf]  ;;  %p669_p3 = por %p668_p2, %p667_p1 }
   0xd   :  { %p670_p4 = pnand %p669_p3, %p663_p0 }
   0xe   :  { %157 = vrot.lane.b32.xlu1 %v71_v4, %s686_s18  ;;  %74 = vrot.lane.b32.xlu0 %v71_v4, %s687_s19 }
  0x12   :  { %331 = vrot.lane.b32.xlu1 %v328_v7, %s687_s19  ;;  %329 = vrot.lane.b32.xlu0 %v325_v5, %s687_s19 }
  0x16   :  { %411 = vrot.lane.b32.xlu1 %v328_v7, %s686_s18  ;;  %409 = vrot.lane.b32.xlu0 %v325_v5, %s686_s18 }
  0x1a   :  { %318 = vperm.xlu0 %659, %v65_v8  }
  0x7c   :  { %v156_v9 = vpop.permute.xlu1 %155  ;;  %v73_v10 = vpop.permute.xlu0 %72 }
  0x80   :  { %v158_v11 = vpop.permute.xlu1 %157  ;;  %v75_v12 = vpop.permute.xlu0 %74 }
  0x81   :  { %v77_v14 = vsel %vm76_vm2, %v73_v10, %v75_v12  ;;  %v160_v15 = vsel %vm159_vm3, %v156_v9, %v158_v11 }
  0x82   :  { %622 = vmatpush3.msk.msra.mxu0 %vm82_vm4, %v77_v14  ;;  %627 = vmatpush3.msk.msra.mxu1 %vm82_vm4, %v160_v15 }
  0x83   :  { %624 = vmatmul.mubr.msk.f32.vlgmr.msra.gmra.mxu0 %vm78_vm5, %v593_v13  ;;  %631 = vmatprep.subr.mxu0 %v684_v1 }
  0x84   :  { %v332_v18 = vpop.permute.xlu1 %331  ;;  %v330_v19 = vpop.permute.xlu0 %329  ;;  %636 = vmatprep.subr.mxu1 %v684_v1  ;;  %629 = vmatmul.mubr.msk.f32.vlgmr.msra.gmra.mxu1 %vm78_vm5, %v66_v16 }
  0x85   :  { %v333_v21 = vsel %vm76_vm2, %v330_v19, %v332_v18  ;;  %632 = vmatpush3.msk.msra.mxu0 %vm82_vm4, %v238_v17  ;;  %633 = vmatprep.mubr.msk.f32.mxu0 %vm685_vm1, %v684_v1 }
  0x86   :  { %637 = vmatpush3.msk.msra.mxu1 %vm82_vm4, %v333_v21  ;;  %638 = vmatprep.mubr.msk.f32.mxu1 %vm685_vm1, %v684_v1 }
  0x87   :  { %634 = vmatmul.mubr.msk.f32.vlgmr.msra.gmra.mxu0 %vm78_vm5, %v598_v20  ;;  %641 = vmatprep.subr.mxu0 %v684_v1 }
  0x88   :  { %v412_v23 = vpop.permute.xlu1 %411  ;;  %v410_v24 = vpop.permute.xlu0 %409  ;;  %639 = vmatmul.mubr.msk.f32.vlgmr.msra.gmra.mxu1 %vm78_vm5, %v593_v13  ;;  %643 = vmatprep.mubr.msk.f32.mxu0 %vm685_vm1, %v684_v1 }
  0x89   :  { %v413_v25 = vsel %vm159_vm3, %v410_v24, %v412_v23  ;;  %646 = vmatprep.subr.mxu1 %v684_v1  ;;  %648 = vmatprep.mubr.msk.f32.mxu1 %vm685_vm1, %v684_v1 }
  0x8a   :  { %642 = vmatpush3.msk.msra.mxu0 %vm82_vm4, %v413_v25  ;;  %647 = vmatpush3.msk.msra.mxu1 %vm82_vm4, %v490_v22 }
  0x8b   :  { %644 = vmatmul.mubr.msk.f32.vlgmr.msra.gmra.mxu0 %vm78_vm5, %v66_v16 }
  0x8c   :  { %649 = vmatmul.mubr.msk.f32.vlgmr.msra.gmra.mxu1 %vm78_vm5, %v598_v20 }
  0x95   :  { %v319_v32 = vpop.permute.xlu0 %318 }
 0x143   :  { %v151_v26 = vpop.f32.mrf.mxu0 }
 0x144   :  { %v232_v27 = vpop.f32.mrf.mxu1 }
 0x145   :  { %v625_v28 = vpop.f32.mrf.mxu0  ;;  %v233_v29 = vadd.f32 %v232_v27, %v151_v26 }
 0x146   :  { %v630_v30 = vpop.f32.mrf.mxu1 }
 0x147   :  { %v311_v31 = vpop.f32.mrf.mxu0 }
 0x148   :  { %v315_v33 = vadd.f32 %v311_v31, %v233_v29  ;;  %v405_v34 = vpop.f32.mrf.mxu1 }
 0x149   :  { %v635_v35 = vpop.f32.mrf.mxu0 }
 0x14a   :  { %v321_v36 = vadd.f32 %v319_v32, %v315_v33  ;;  %v640_v37 = vpop.f32.mrf.mxu1 }
 0x14b   :  { %v485_v38 = vpop.f32.mrf.mxu0 }
 0x14c   :  { %322 = vst [vmem:[#allocation3] sm:$0xff] %v321_v36  ;;  %v486_v39 = vadd.f32 %v485_v38, %v405_v34  ;;  %v563_v40 = vpop.f32.mrf.mxu1 }
 0x14d   :  { %v645_v41 = vpop.f32.mrf.mxu0 }
 0x14e   :  { %v567_v42 = vadd.f32 %v563_v40, %v486_v39  ;;  %v650_v43 = vpop.f32.mrf.mxu1 }
 0x150   :  { %v568_v44 = vadd.f32 %v567_v42, %v319_v32 }
 0x152   :  { %570 = vst [vmem:[#allocation3 + $0x8] sm:$0xff] %v568_v44 }
 0x153   :  { %673 = shalt.err (!%p670_p4)
}
 0x154   :  { %s690_s28 = smov 128   ;;  %s691_s29 = smov 8  }
 0x155   :  { %582 = dma.vmem_to_hbm [thread:$0]  %s577_s26, 256, %s778_s4, [#allocation4], %s690_s28, %s690_s28, %s691_s29  }
 0x156   :  { %682 = dma.done.wait [#allocation4], 256  }
 0x157   :  { %683 = vsyncadd [#allocation4], 4294967040 }
 0x158   :  { %586 = vsyncpa [#allocation4], 1 }

</bundles_post_ra>
